<compile_context>
chip_gen: v6e
topology: v6e:2x2x1
jax: 0.10.0
libtpu: 0.0.40
codegen_flags: <defaults>
</compile_context>

<pallas_src>
import functools

import jax
import jax.numpy as jnp
from jax.experimental import pallas as pl
from jax.experimental.pallas import tpu as pltpu


def _rup(x, m):
    return (x + m - 1) // m * m


def _tile_m(M):
    if M <= 512:
        t = _rup(M, 16)          # 16: bf16 sublane packing
        return t, t
    return 512, _rup(M, 512)


def _tile_k(K):
    Kp = _rup(K, 128)
    if Kp <= 1536:               # single K step, no revisits
        return Kp, Kp
    return 512, _rup(K, 512)


def _tile_n(N):
    Np = _rup(N, 128)
    if Np <= 512:
        return Np, Np
    return 256, _rup(N, 256)


# ---------------------------------------------------------------------------
# Fused matmul Pallas kernel:  out = act((pre(A) @ B) * n_scale + n_shift)
#   pre(A) = relu(A * k_scale + k_shift)  (optional, exact for 1x1 convs)
#   A cast to bf16 for the MXU, accumulation in f32, epilogue in f32.
# ---------------------------------------------------------------------------

def _mm_kernel(*refs, act, prologue):
    if prologue:
        a_ref, b_ref, ks_ref, kb_ref, ns_ref, nb_ref, o_ref, acc_ref = refs
    else:
        a_ref, b_ref, ns_ref, nb_ref, o_ref, acc_ref = refs

    @pl.when(pl.program_id(2) == 0)
    def _init():
        acc_ref[...] = jnp.zeros_like(acc_ref)

    a = a_ref[...]
    if prologue:
        a = jnp.maximum(a.astype(jnp.float32) * ks_ref[...] + kb_ref[...], 0.0)
    acc_ref[...] += jnp.dot(a.astype(jnp.bfloat16), b_ref[...],
                            preferred_element_type=jnp.float32)

    @pl.when(pl.program_id(2) == pl.num_programs(2) - 1)
    def _fin():
        r = acc_ref[...] * ns_ref[...] + nb_ref[...]
        if act == "relu":
            r = jnp.maximum(r, 0.0)
        elif act == "sigmoid":
            # numerically safe sigmoid (f32 epilogue on all generations, incl. v5e)
            r = jnp.where(r >= 0.0,
                          1.0 / (1.0 + jnp.exp(-r)),
                          jnp.exp(r) / (1.0 + jnp.exp(r)))
        o_ref[...] = r.astype(o_ref.dtype)


@functools.partial(jax.jit, static_argnames=("act", "out_dtype"))
def pallas_matmul(a, b, n_scale, n_shift, k_scale=None, k_shift=None, *,
                  act=None, out_dtype=jnp.bfloat16):
    """out = act((relu(a*k_scale+k_shift) if k_scale else a) @ b * n_scale + n_shift)."""
    M, K = a.shape
    _, N = b.shape
    tm, Mp = _tile_m(M)
    tk, Kp = _tile_k(K)
    tn, Np = _tile_n(N)
    prologue = k_scale is not None

    a_p = jnp.pad(a, ((0, Mp - M), (0, Kp - K)))
    b_p = jnp.pad(b.astype(jnp.bfloat16), ((0, Kp - K), (0, Np - N)))
    ns_p = jnp.pad(n_scale.astype(jnp.float32), (0, Np - N)).reshape(1, Np)
    nb_p = jnp.pad(n_shift.astype(jnp.float32), (0, Np - N)).reshape(1, Np)

    in_specs = [
        pl.BlockSpec((tm, tk), lambda i, j, k: (i, k)),
        pl.BlockSpec((tk, tn), lambda i, j, k: (k, j)),
    ]
    args = [a_p, b_p]
    if prologue:
        ks_p = jnp.pad(k_scale.astype(jnp.float32), (0, Kp - K)).reshape(1, Kp)
        kb_p = jnp.pad(k_shift.astype(jnp.float32), (0, Kp - K)).reshape(1, Kp)
        in_specs += [pl.BlockSpec((1, tk), lambda i, j, k: (0, k)),
                     pl.BlockSpec((1, tk), lambda i, j, k: (0, k))]
        args += [ks_p, kb_p]
    in_specs += [pl.BlockSpec((1, tn), lambda i, j, k: (0, j)),
                 pl.BlockSpec((1, tn), lambda i, j, k: (0, j))]
    args += [ns_p, nb_p]

    out = pl.pallas_call(
        functools.partial(_mm_kernel, act=act, prologue=prologue),
        out_shape=jax.ShapeDtypeStruct((Mp, Np), out_dtype),
        grid_spec=pltpu.PrefetchScalarGridSpec(
            num_scalar_prefetch=0,
            grid=(Mp // tm, Np // tn, Kp // tk),
            in_specs=in_specs,
            out_specs=pl.BlockSpec((tm, tn), lambda i, j, k: (i, j)),
            scratch_shapes=[pltpu.VMEM((tm, tn), jnp.float32)],
        ),
        compiler_params=pltpu.CompilerParams(
            dimension_semantics=("parallel", "parallel", "arbitrary"),
            vmem_limit_bytes=48 * 1024 * 1024),
    )(*args)
    return out[:M, :N]


# ---------------------------------------------------------------------------
# NN ops built on the fused matmul kernel (glue in plain JAX)
# ---------------------------------------------------------------------------

def _bn_st(bn, eps=1e-5):
    s = bn["gamma"] / jnp.sqrt(bn["var"] + eps)
    return s, bn["beta"] - bn["mean"] * s


def _im2col(x, kh, kw, stride, padding):
    # TODO(synk): host-materialized patches; in-kernel (ky,kx)-grid streaming not done.
    n, h, w, c = x.shape
    xp = jnp.pad(x, ((0, 0), (padding, padding), (padding, padding), (0, 0)))
    oh = (h + 2 * padding - kh) // stride + 1
    ow = (w + 2 * padding - kw) // stride + 1
    cols = []
    for ky in range(kh):
        for kx in range(kw):
            cols.append(xp[:, ky:ky + (oh - 1) * stride + 1:stride,
                           kx:kx + (ow - 1) * stride + 1:stride, :])
    patches = jnp.stack(cols, axis=3)                      # [n, oh, ow, kh*kw, c]
    return patches.reshape(n * oh * ow, kh * kw * c), oh, ow


def conv2d(x, w, stride=1, padding=0, bias=None, act=None,
           pre_bn=None, post_bn=None, out_dtype=jnp.bfloat16):
    """Conv2d with fused BN/bias/activation.  x: NHWC, w: [Cout, Cin, KH, KW] (PyTorch)."""
    oc, ic, kh, kw = w.shape
    n = x.shape[0]
    if kh == 1 and kw == 1 and stride == 1 and padding == 0:
        patches = x.reshape(-1, x.shape[-1])
        oh, ow = x.shape[1], x.shape[2]
        wr = w[:, :, 0, 0].T                               # (Cin, Cout)
    else:
        assert pre_bn is None   # prologue only exact when there is no zero padding
        patches, oh, ow = _im2col(x, kh, kw, stride, padding)
        wr = jnp.transpose(w, (2, 3, 1, 0)).reshape(kh * kw * ic, oc)

    n_scale = jnp.ones((oc,), jnp.float32)
    n_shift = (bias.astype(jnp.float32) if bias is not None
               else jnp.zeros((oc,), jnp.float32))
    if post_bn is not None:
        s, t = post_bn
        n_shift = s * n_shift + t
        n_scale = s
    k_scale = k_shift = None
    if pre_bn is not None:
        k_scale, k_shift = pre_bn

    out = pallas_matmul(patches, wr, n_scale, n_shift, k_scale, k_shift,
                        act=act, out_dtype=out_dtype)
    return out.reshape(n, oh, ow, oc)


def conv_transpose2d_s2(x, w, b):
    """ConvTranspose2d(k=3, stride=2, padding=1) via sub-pixel phase decomposition.

    out[2m,2n]     = x[m,n]   . w[:,:,1,1]
    out[2m,2n+1]   = x[m,n+1] . w[:,:,1,0] + x[m,n]   . w[:,:,1,2]
    out[2m+1,2n]   = x[m+1,n] . w[:,:,0,1] + x[m,n]   . w[:,:,2,1]
    out[2m+1,2n+1] = x[m+1,n+1].w[:,:,0,0] + x[m+1,n].w[:,:,0,2]
                   + x[m,n+1] . w[:,:,2,0] + x[m,n]   . w[:,:,2,2]
    (w is PyTorch ConvTranspose2d layout [Cin, Cout, KH, KW])
    """
    n, h, wd, c = x.shape
    cin, oc, kh, kw = w.shape
    assert (kh, kw) == (3, 3) and cin == c
    oh, ow = 2 * h - 1, 2 * wd - 1
    bias = b.astype(jnp.float32)
    ones = jnp.ones((oc,), jnp.float32)

    def phase(slices, taps):
        A = jnp.concatenate(slices, axis=-1)
        sh = A.shape
        B = jnp.concatenate([w[:, :, i, j] for (i, j) in taps], axis=0)
        y = pallas_matmul(A.reshape(-1, sh[-1]), B, ones, bias)
        return y.reshape(sh[0], sh[1], sh[2], oc)

    ee = phase([x], [(1, 1)])
    eo = phase([x[:, :, 1:, :], x[:, :, :-1, :]], [(1, 0), (1, 2)])
    oe = phase([x[:, 1:, :, :], x[:, :-1, :, :]], [(0, 1), (2, 1)])
    oo = phase([x[:, 1:, 1:, :], x[:, 1:, :-1, :],
                x[:, :-1, 1:, :], x[:, :-1, :-1, :]],
               [(0, 0), (0, 2), (2, 0), (2, 2)])

    out = jnp.zeros((n, oh, ow, oc), ee.dtype)
    out = out.at[:, 0::2, 0::2, :].set(ee)
    out = out.at[:, 0::2, 1::2, :].set(eo)
    out = out.at[:, 1::2, 0::2, :].set(oe)
    out = out.at[:, 1::2, 1::2, :].set(oo)
    return out


def maxpool_3x3_s2_p1(x):
    n, h, w, c = x.shape
    xp = jnp.pad(x, ((0, 0), (1, 1), (1, 1), (0, 0)), constant_values=-jnp.inf)
    oh, ow = (h + 2 - 3) // 2 + 1, (w + 2 - 3) // 2 + 1
    vals = [xp[:, ky:ky + (oh - 1) * 2 + 1:2, kx:kx + (ow - 1) * 2 + 1:2, :]
            for ky in range(3) for kx in range(3)]
    return jnp.max(jnp.stack(vals, 0), axis=0)


def avgpool_2x2(x):
    n, h, w, c = x.shape
    return x.reshape(n, h // 2, 2, w // 2, 2, c).mean(axis=(2, 4))


def _interp_matrix(out_size, in_size):
    # bilinear, align_corners=True (matches nn.Upsample(mode='bilinear', align_corners=True))
    if in_size == 1:
        return jnp.ones((out_size, 1), jnp.float32)
    src = jnp.arange(out_size, dtype=jnp.float32) * (in_size - 1) / (out_size - 1)
    j0 = jnp.clip(jnp.floor(src), 0, in_size - 2).astype(jnp.int32)
    frac = src - j0.astype(jnp.float32)
    rows = jnp.arange(out_size)
    A = jnp.zeros((out_size, in_size), jnp.float32)
    A = A.at[rows, j0].add(1.0 - frac)
    A = A.at[rows, j0 + 1].add(frac)
    return A


def bilinear_upsample(x, oh, ow, out_dtype=jnp.bfloat16):
    """Separable bilinear resize; data is the (large-M) A operand, interp matrix is B."""
    n, h, w, c = x.shape
    Ah = _interp_matrix(oh, h).T          # (h, oh)
    Aw = _interp_matrix(ow, w).T          # (w, ow)
    ones = lambda k: jnp.ones((k,), jnp.float32)
    zero = lambda k: jnp.zeros((k,), jnp.float32)
    # H interpolation: rows = (n, w, c), cols = h
    t = jnp.transpose(x, (0, 2, 3, 1)).reshape(n * w * c, h)
    t = pallas_matmul(t, Ah, ones(oh), zero(oh))
    t = t.reshape(n, w, c, oh)
    # W interpolation: rows = (n, oh, c), cols = w
    t = jnp.transpose(t, (0, 3, 2, 1)).reshape(n * oh * c, w)
    t = pallas_matmul(t, Aw, ones(ow), zero(ow), out_dtype=out_dtype)
    t = t.reshape(n, oh, c, ow)
    return jnp.transpose(t, (0, 1, 3, 2))


def deform_conv2d(x, dp, ks=3, pad=1):
    """Modulated deformable conv (reference DeformConv2d, modulation=True, stride=1)."""
    n, h, w, c = x.shape
    Nk = ks * ks
    offset = conv2d(x, dp["p_w"], padding=1, bias=dp["p_b"],
                    out_dtype=jnp.float32)                                  # [n,h,w,2*Nk]
    m = conv2d(x, dp["m_w"], padding=1, bias=dp["m_b"], act="sigmoid")      # [n,h,w,Nk]

    xp = jnp.pad(x, ((0, 0), (pad, pad), (pad, pad), (0, 0)))
    Hp, Wp = h + 2 * pad, w + 2 * pad
    half = (ks - 1) // 2
    pn_y, pn_x = jnp.meshgrid(jnp.arange(-half, half + 1, dtype=jnp.float32),
                              jnp.arange(-half, half + 1, dtype=jnp.float32),
                              indexing="ij")
    p0_y = jnp.arange(1, h + 1, dtype=jnp.float32)
    p0_x = jnp.arange(1, w + 1, dtype=jnp.float32)
    py = p0_y.reshape(1, h, 1, 1) + pn_y.reshape(1, 1, 1, Nk) + offset[..., :Nk]
    px = p0_x.reshape(1, 1, w, 1) + pn_x.reshape(1, 1, 1, Nk) + offset[..., Nk:]

    y0, x0 = jnp.floor(py), jnp.floor(px)
    y0c, x0c = jnp.clip(y0, 0, Hp - 1), jnp.clip(x0, 0, Wp - 1)
    y1c, x1c = jnp.clip(y0 + 1, 0, Hp - 1), jnp.clip(x0 + 1, 0, Wp - 1)
    pyc, pxc = jnp.clip(py, 0, Hp - 1), jnp.clip(px, 0, Wp - 1)
    g_lt = (1 + (y0c - pyc)) * (1 + (x0c - pxc))
    g_rb = (1 - (y1c - pyc)) * (1 - (x1c - pxc))
    g_lb = (1 + (y0c - pyc)) * (1 - (x1c - pxc))
    g_rt = (1 - (y1c - pyc)) * (1 + (x0c - pxc))

    # TODO(synk): data-dependent bilinear-sampling gather stays in JAX glue.
    xf = xp.reshape(n, Hp * Wp, c)

    def gather(qy, qx):
        idx = (qy.astype(jnp.int32) * Wp + qx.astype(jnp.int32)).reshape(n, h * w * Nk)
        idx = jnp.broadcast_to(idx[:, :, None], (n, h * w * Nk, c))
        return jnp.take_along_axis(xf, idx, axis=1).reshape(n, h, w, Nk, c)

    x_off = (g_lt[..., None] * gather(y0c, x0c) + g_rb[..., None] * gather(y1c, x1c) +
             g_lb[..., None] * gather(y0c, x1c) + g_rt[..., None] * gather(y1c, x0c))
    x_off = x_off * m[..., None]                                   # modulation

    oc = dp["w"].shape[0]
    wr = jnp.transpose(dp["w"], (2, 3, 1, 0)).reshape(Nk * c, oc)  # (ky,kx,cin) ordering
    out = pallas_matmul(x_off.reshape(n * h * w, Nk * c), wr,
                        jnp.ones((oc,), jnp.float32), jnp.zeros((oc,), jnp.float32))
    return out.reshape(n, h, w, oc)


# ---------------------------------------------------------------------------
# Deterministic synthetic parameters (shapes follow the PyTorch module)
# ---------------------------------------------------------------------------

class _Keys:
    def __init__(self, seed=0):
        self._key = jax.random.PRNGKey(seed)

    def __call__(self):
        self._key, k = jax.random.split(self._key)
        return k


def _conv_w(kg, oc, ic, kh, kw, scale=None):
    std = (2.0 / (ic * kh * kw)) ** 0.5 if scale is None else scale
    return std * jax.random.normal(kg(), (oc, ic, kh, kw), jnp.float32)


def _bias(kg, c):
    return 0.01 * jax.random.normal(kg(), (c,), jnp.float32)


def _bn(kg, c):
    return dict(
        gamma=1.0 + 0.05 * jax.random.normal(kg(), (c,), jnp.float32),
        beta=0.05 * jax.random.normal(kg(), (c,), jnp.float32),
        mean=0.05 * jax.random.normal(kg(), (c,), jnp.float32),
        var=1.0 + 0.1 * jax.random.uniform(kg(), (c,), jnp.float32),
    )


def _deform_params(kg, ic, oc, ks=3):
    return dict(
        w=_conv_w(kg, oc, ic, ks, ks),                       # main conv, bias=False
        p_w=_conv_w(kg, 2 * ks * ks, ic, 3, 3, scale=0.02),  # offset conv
        p_b=_bias(kg, 2 * ks * ks),
        m_w=_conv_w(kg, ks * ks, ic, 3, 3, scale=0.02),      # modulation conv
        m_b=_bias(kg, ks * ks),
    )


def init_params(seed=0):
    kg = _Keys(seed)
    p = {}
    # densenet169.features[:-5]: conv0/norm0/relu0/pool0, denseblock1(6), transition1, denseblock2(12)
    p["conv0_w"] = _conv_w(kg, 64, 3, 7, 7)
    p["norm0"] = _bn(kg, 64)
    growth, bn_size = 32, 4

    def dense_block(c_in, n_layers):
        layers, c = [], c_in
        for _ in range(n_layers):
            layers.append(dict(
                norm1=_bn(kg, c),
                conv1_w=_conv_w(kg, bn_size * growth, c, 1, 1),
                norm2=_bn(kg, bn_size * growth),
                conv2_w=_conv_w(kg, growth, bn_size * growth, 3, 3)))
            c += growth
        return layers, c

    p["block1"], c = dense_block(64, 6)                 # -> 256
    p["trans1_norm"] = _bn(kg, c)
    p["trans1_conv_w"] = _conv_w(kg, c // 2, c, 1, 1)
    c = c // 2                                          # 128
    p["block2"], c = dense_block(c, 12)                 # -> 512 (layer1 in_channels)

    p["layer1_w"] = _conv_w(kg, 256, 512, 3, 3)
    p["layer1_b"] = _bias(kg, 256)
    p["deform1"] = _deform_params(kg, 256, 128)
    p["deform2"] = _deform_params(kg, 128, 128)
    p["deform3"] = _deform_params(kg, 256, 64)
    # ConvTranspose2d weights stored as [Cin, Cout, KH, KW] (PyTorch layout)
    p["deconv1_w"] = jnp.transpose(_conv_w(kg, 64, 64, 3, 3), (1, 0, 2, 3))
    p["deconv1_b"] = _bias(kg, 64)
    p["deconv2_w"] = jnp.transpose(_conv_w(kg, 128, 64, 3, 3), (1, 0, 2, 3))
    p["deconv2_b"] = _bias(kg, 128)
    p["deconv3_w"] = jnp.transpose(_conv_w(kg, 1, 128, 3, 3), (1, 0, 2, 3))
    p["deconv3_b"] = _bias(kg, 1)
    return p


# ---------------------------------------------------------------------------
# Forward pass (mirrors DenseNetBackbone.forward)
# ---------------------------------------------------------------------------

def _dense_layer(x, lp):
    s1, t1 = _bn_st(lp["norm1"])
    s2, t2 = _bn_st(lp["norm2"])
    # relu(bn1(x)) -> 1x1 conv -> bn2 -> relu, all in ONE fused Pallas matmul call
    h = conv2d(x, lp["conv1_w"], pre_bn=(s1, t1), post_bn=(s2, t2), act="relu")
    # 3x3 conv (zero padding on the already-activated tensor, like PyTorch)
    h = conv2d(h, lp["conv2_w"], padding=1)
    return jnp.concatenate([x, h], axis=-1)


def densenet_backbone_forward(params, x_nchw):
    x = jnp.transpose(x_nchw, (0, 2, 3, 1)).astype(jnp.bfloat16)   # NCHW -> NHWC, bf16
    # custom_model = densenet169.features[:-5]
    s0, t0 = _bn_st(params["norm0"])
    x = conv2d(x, params["conv0_w"], stride=2, padding=3,
               post_bn=(s0, t0), act="relu")                       # conv0 + norm0 + relu
    x = maxpool_3x3_s2_p1(x)
    for lp in params["block1"]:
        x = _dense_layer(x, lp)
    st, tt = _bn_st(params["trans1_norm"])
    x = conv2d(x, params["trans1_conv_w"], pre_bn=(st, tt))        # norm + relu + 1x1 conv
    x = avgpool_2x2(x)
    for lp in params["block2"]:
        x = _dense_layer(x, lp)
    # layer1
    x = conv2d(x, params["layer1_w"], bias=params["layer1_b"], padding=1)
    # deformable stack
    d1 = deform_conv2d(x, params["deform1"])
    d2 = deform_conv2d(d1, params["deform2"])
    x = jnp.concatenate([d1, d2], axis=-1)                 # torch.cat((d1, d2), 1)
    x = deform_conv2d(x, params["deform3"])
    # decoder
    x = conv_transpose2d_s2(x, params["deconv1_w"], params["deconv1_b"])
    x = conv_transpose2d_s2(x, params["deconv2_w"], params["deconv2_b"])
    x = bilinear_upsample(x, 112, 112)
    x = conv_transpose2d_s2(x, params["deconv3_w"], params["deconv3_b"])
    x = bilinear_upsample(x, 224, 224, out_dtype=jnp.float32)
    return jnp.transpose(x, (0, 3, 1, 2))                  # NHWC -> NCHW


if __name__ == "__main__":
    key = jax.random.PRNGKey(0)
    # small NCHW RGB input; output is (N, 1, 224, 224) like the PyTorch module
    x = jax.random.normal(key, (2, 3, 32, 32), jnp.float32)
    params = init_params(seed=0)
    out = densenet_backbone_forward(params, x)
    out = jax.block_until_ready(out)
    assert out.shape == (2, 1, 224, 224), out.shape
    assert bool(jnp.all(jnp.isfinite(out)))
    print("KERNEL_OK")
</pallas_src>

<mosaic_0001>
module attributes {stable_mosaic.version = 11 : i64} {
  func.func @_mm_kernel(%arg0: i32, %arg1: i32, %arg2: i32, %arg3: memref<512x256xbf16, #tpu.memory_space<vmem>>, %arg4: memref<256x128xbf16, #tpu.memory_space<vmem>>, %arg5: memref<1x128xf32, #tpu.memory_space<vmem>>, %arg6: memref<1x128xf32, #tpu.memory_space<vmem>>, %arg7: memref<512x128xbf16, #tpu.memory_space<vmem>>, %arg8: memref<512x128xf32, #tpu.memory_space<vmem>>) attributes {dimension_semantics = [#tpu.dimension_semantics<parallel>, #tpu.dimension_semantics<parallel>, #tpu.dimension_semantics<arbitrary>], iteration_bounds = array<i64: 1, 1, 1>, scalar_prefetch = 0 : i64, scratch_operands = 1 : i64, tpu.core_type = #tpu.core_type<tc>, window_params = [{transform_indices = @transform_0, window_bounds = array<i64: 512, 256>}, {transform_indices = @transform_1, window_bounds = array<i64: 256, 128>}, {transform_indices = @transform_2, window_bounds = array<i64: 1, 128>}, {transform_indices = @transform_3, window_bounds = array<i64: 1, 128>}, {transform_indices = @transform_4, window_bounds = array<i64: 512, 128>}]} {
    %c0_i32 = arith.constant 0 : i32
    %0 = arith.cmpi eq, %arg2, %c0_i32 : i32
    %1 = arith.extui %0 : i1 to i32
    %c0_i32_0 = arith.constant 0 : i32
    %2 = arith.cmpi ne, %1, %c0_i32_0 : i32
    scf.if %2 {
      %cst_10 = arith.constant 0.000000e+00 : f32
      %12 = vector.broadcast %cst_10 : f32 to vector<512x128xf32>
      %c0_11 = arith.constant 0 : index
      %c0_12 = arith.constant 0 : index
      %13 = vector.load %arg8[%c0_11, %c0_12] : memref<512x128xf32, #tpu.memory_space<vmem>>, vector<512x128xf32>
      tpu.vector_store %arg8[%c0_11, %c0_12], %12 {strides = array<i32>} : memref<512x128xf32, #tpu.memory_space<vmem>>, vector<512x128xf32>,
    } else {
    }
    %c0 = arith.constant 0 : index
    %c0_1 = arith.constant 0 : index
    %3 = vector.load %arg3[%c0, %c0_1] : memref<512x256xbf16, #tpu.memory_space<vmem>>, vector<512x256xbf16>
    %c0_2 = arith.constant 0 : index
    %c0_3 = arith.constant 0 : index
    %4 = vector.load %arg8[%c0_2, %c0_3] : memref<512x128xf32, #tpu.memory_space<vmem>>, vector<512x128xf32>
    %c0_4 = arith.constant 0 : index
    %c0_5 = arith.constant 0 : index
    %5 = vector.load %arg4[%c0_4, %c0_5] : memref<256x128xbf16, #tpu.memory_space<vmem>>, vector<256x128xbf16>
    %cst = arith.constant dense<0.000000e+00> : vector<512x128xf32>
    %6 = tpu.matmul %3, %5, %cst {dimension_numbers = #tpu.dot_dimension_numbers<[1], [0], [0], [1], [0, 0, 1, 1], [], []>} : vector<512x256xbf16>, vector<256x128xbf16>, vector<512x128xf32> -> vector<512x128xf32>
    %7 = arith.addf %4, %6 : vector<512x128xf32>
    %c0_6 = arith.constant 0 : index
    %c0_7 = arith.constant 0 : index
    %8 = vector.load %arg8[%c0_6, %c0_7] : memref<512x128xf32, #tpu.memory_space<vmem>>, vector<512x128xf32>
    tpu.vector_store %arg8[%c0_6, %c0_7], %7 {strides = array<i32>} : memref<512x128xf32, #tpu.memory_space<vmem>>, vector<512x128xf32>,
    %c0_i32_8 = arith.constant 0 : i32
    %9 = arith.cmpi eq, %arg2, %c0_i32_8 : i32
    %10 = arith.extui %9 : i1 to i32
    %c0_i32_9 = arith.constant 0 : i32
    %11 = arith.cmpi ne, %10, %c0_i32_9 : i32
    scf.if %11 {
      %c0_10 = arith.constant 0 : index
      %c0_11 = arith.constant 0 : index
      %12 = vector.load %arg8[%c0_10, %c0_11] : memref<512x128xf32, #tpu.memory_space<vmem>>, vector<512x128xf32>
      %c0_12 = arith.constant 0 : index
      %c0_13 = arith.constant 0 : index
      %13 = vector.load %arg5[%c0_12, %c0_13] : memref<1x128xf32, #tpu.memory_space<vmem>>, vector<1x128xf32>
      %14 = vector.broadcast %13 : vector<1x128xf32> to vector<512x128xf32>
      %15 = arith.mulf %12, %14 : vector<512x128xf32>
      %c0_14 = arith.constant 0 : index
      %c0_15 = arith.constant 0 : index
      %16 = vector.load %arg6[%c0_14, %c0_15] : memref<1x128xf32, #tpu.memory_space<vmem>>, vector<1x128xf32>
      %17 = vector.broadcast %16 : vector<1x128xf32> to vector<512x128xf32>
      %18 = arith.addf %15, %17 : vector<512x128xf32>
      %cst_16 = arith.constant 0.000000e+00 : f32
      %19 = vector.broadcast %cst_16 : f32 to vector<512x128xf32>
      %20 = arith.maximumf %18, %19 : vector<512x128xf32>
      %21 = arith.truncf %20 : vector<512x128xf32> to vector<512x128xbf16>
      %c0_17 = arith.constant 0 : index
      %c0_18 = arith.constant 0 : index
      %22 = vector.load %arg7[%c0_17, %c0_18] : memref<512x128xbf16, #tpu.memory_space<vmem>>, vector<512x128xbf16>
      tpu.vector_store %arg7[%c0_17, %c0_18], %21 {strides = array<i32>} : memref<512x128xbf16, #tpu.memory_space<vmem>>, vector<512x128xbf16>,
    } else {
    }
    return
  }
  func.func @transform_0(%arg0: i32, %arg1: i32, %arg2: i32) -> (i32, i32) {
    %c0_i32 = arith.constant 0 : i32
    return %arg0, %arg2 : i32, i32
  }
  func.func @transform_1(%arg0: i32, %arg1: i32, %arg2: i32) -> (i32, i32) {
    %c0_i32 = arith.constant 0 : i32
    return %arg2, %arg1 : i32, i32
  }
  func.func @transform_2(%arg0: i32, %arg1: i32, %arg2: i32) -> (i32, i32) {
    %c0_i32 = arith.constant 0 : i32
    %c0_i32_0 = arith.constant 0 : i32
    return %c0_i32, %arg1 : i32, i32
  }
  func.func @transform_3(%arg0: i32, %arg1: i32, %arg2: i32) -> (i32, i32) {
    %c0_i32 = arith.constant 0 : i32
    %c0_i32_0 = arith.constant 0 : i32
    return %c0_i32, %arg1 : i32, i32
  }
  func.func @transform_4(%arg0: i32, %arg1: i32, %arg2: i32) -> (i32, i32) {
    %c0_i32 = arith.constant 0 : i32
    return %arg0, %arg1 : i32, i32
  }
}

</mosaic_0001>

<bundles_post_ra>
// kernel: pallas_matmul.1
= control target key start
LH: loop header
LB: loop body
LE: loop exit
PB: predicated region body
PF: predicated region fallthrough
CT: control target
= control target key end

     0   :  { %v2222_v0 = vmov 0   ;;  %s2754_s1 = inlined_call_operand.vmem [shape: bf16[256,128], index: 1, kind: input, shape index: {}]   ;;  %s2755_s0 = inlined_call_operand.vmem [shape: bf16[512,256], index: 0, kind: input, shape index: {}]   ;;  %s2756_s2 = inlined_call_operand.vmem [shape: f32[1,128], index: 2, kind: input, shape index: {}]   ;;  %s2757_s3 = inlined_call_operand.vmem [shape: f32[1,128], index: 3, kind: input, shape index: {}]   ;;  %s2758_s4 = inlined_call_operand.vmem [shape: bf16[512,128], index: 4, kind: output, shape index: {}]  }
   0x1   :  { %662 = vmatprep.subr.bf16.mxu0 %v2222_v0  ;;  %2077 = vmatprep.subr.bf16.mxu1 %v2222_v0  ;;  %v2110_v1 = vld [vmem:[%s2754_s1 + $0x38] sm:$0xff]   ;;  %v2111_v2 = vld [vmem:[%s2754_s1 + $0x30] sm:$0xff]   ;;  %v2112_v3 = vld [vmem:[%s2754_s1 + $0x28] sm:$0xff]  }
   0x2   :  { %663 = vmatpush1.bf16.msra.mxu0 %v2110_v1  ;;  %2093 = vmatpush1.bf16.msra.mxu1 %v2110_v1  ;;  %v2113_v4 = vld [vmem:[%s2754_s1 + $0x20] sm:$0xff]   ;;  %v2114_v5 = vld [vmem:[%s2754_s1 + $0x18] sm:$0xff]   ;;  %v2115_v7 = vld [vmem:[%s2754_s1 + $0x10] sm:$0xff]  }
   0x3   :  { %664 = vmatprep.subr.bf16.mxu0 %v2222_v0  ;;  %2078 = vmatprep.subr.bf16.mxu1 %v2222_v0  ;;  %v2128_v6 = vld [vmem:[%s2755_s0 + $0x4] ss:$8 sps:$4 sm:$0xff]   ;;  %v2118_v11 = vld [vmem:[%s2754_s1 + $0x78] sm:$0xff]   ;;  %v2119_v12 = vld [vmem:[%s2754_s1 + $0x70] sm:$0xff]  }
   0x4   :  { %v2131_v8 = vld [vmem:[%s2755_s0 + $0x104] ss:$8 sps:$4 sm:$0xff]   ;;  %694 = vmatprep.mubr.bf16.mxu0 %v2128_v6  ;;  %v2122_v15 = vld [vmem:[%s2754_s1 + $0x58] sm:$0xff]   ;;  %v2123_v16 = vld [vmem:[%s2754_s1 + $0x50] sm:$0xff]  }
   0x5   :  { %822 = vmatprep.mubr.bf16.mxu1 %v2131_v8  ;;  %v2116_v9 = vld [vmem:[%s2754_s1 + $0x8] sm:$0xff]   ;;  %v2117_v10 = vld [vmem:[%s2754_s1] sm:$0xff]   ;;  %v2132_v21 = vld [vmem:[%s2755_s0 + $0x14] ss:$8 sps:$4 sm:$0xff]  }
   0x6   :  { %665 = vmatpush1.bf16.msra.mxu0 %v2111_v2  ;;  %2094 = vmatpush1.bf16.msra.mxu1 %v2111_v2  ;;  %v2120_v13 = vld [vmem:[%s2754_s1 + $0x68] sm:$0xff]   ;;  %v2121_v14 = vld [vmem:[%s2754_s1 + $0x60] sm:$0xff]   ;;  %v2134_v22 = vld [vmem:[%s2755_s0 + $0x114] ss:$8 sps:$4 sm:$0xff]  }
   0x7   :  { %666 = vmatprep.subr.bf16.mxu0 %v2222_v0  ;;  %2079 = vmatprep.subr.bf16.mxu1 %v2222_v0  ;;  %v2124_v17 = vld [vmem:[%s2754_s1 + $0x48] sm:$0xff]   ;;  %v2125_v18 = vld [vmem:[%s2754_s1 + $0x40] sm:$0xff]   ;;  %v2136_v23 = vld [vmem:[%s2755_s0 + $0x10] ss:$8 sps:$4 sm:$0xff]  }
   0x8   :  { %v2126_v19 = vld [vmem:[%s2755_s0] ss:$8 sps:$4 sm:$0xff]   ;;  %v2137_v24 = vld [vmem:[%s2755_s0 + $0x110] ss:$8 sps:$4 sm:$0xff]   ;;  %v2138_v25 = vld [vmem:[%s2755_s0 + $0x24] ss:$8 sps:$4 sm:$0xff]  }
   0x9   :  { %v2129_v20 = vld [vmem:[%s2755_s0 + $0x100] ss:$8 sps:$4 sm:$0xff]   ;;  %v2140_v26 = vld [vmem:[%s2755_s0 + $0x124] ss:$8 sps:$4 sm:$0xff]   ;;  %v2144_v29 = vld [vmem:[%s2755_s0 + $0x34] ss:$8 sps:$4 sm:$0xff]  }
   0xa   :  { %667 = vmatpush1.bf16.msra.mxu0 %v2112_v3  ;;  %2095 = vmatpush1.bf16.msra.mxu1 %v2112_v3  ;;  %v2142_v27 = vld [vmem:[%s2755_s0 + $0x20] ss:$8 sps:$4 sm:$0xff]   ;;  %v2146_v30 = vld [vmem:[%s2755_s0 + $0x134] ss:$8 sps:$4 sm:$0xff]   ;;  %v2148_v31 = vld [vmem:[%s2755_s0 + $0x30] ss:$8 sps:$4 sm:$0xff]  }
   0xb   :  { %668 = vmatprep.subr.bf16.mxu0 %v2222_v0  ;;  %2080 = vmatprep.subr.bf16.mxu1 %v2222_v0  ;;  %v2143_v28 = vld [vmem:[%s2755_s0 + $0x120] ss:$8 sps:$4 sm:$0xff]   ;;  %v2149_v32 = vld [vmem:[%s2755_s0 + $0x130] ss:$8 sps:$4 sm:$0xff]   ;;  %v2150_v33 = vld [vmem:[%s2755_s0 + $0x44] ss:$8 sps:$4 sm:$0xff]  }
   0xc   :  { %v2152_v34 = vld [vmem:[%s2755_s0 + $0x144] ss:$8 sps:$4 sm:$0xff]   ;;  %v2154_v35 = vld [vmem:[%s2755_s0 + $0x40] ss:$8 sps:$4 sm:$0xff]   ;;  %v2156_v37 = vld [vmem:[%s2755_s0 + $0x54] ss:$8 sps:$4 sm:$0xff]  }
   0xd   :  { %v2155_v36 = vld [vmem:[%s2755_s0 + $0x140] ss:$8 sps:$4 sm:$0xff]   ;;  %v2158_v38 = vld [vmem:[%s2755_s0 + $0x154] ss:$8 sps:$4 sm:$0xff]   ;;  %v2160_v39 = vld [vmem:[%s2755_s0 + $0x50] ss:$8 sps:$4 sm:$0xff]  }
   0xe   :  { %669 = vmatpush1.bf16.msra.mxu0 %v2113_v4  ;;  %2096 = vmatpush1.bf16.msra.mxu1 %v2113_v4  ;;  %v2161_v40 = vld [vmem:[%s2755_s0 + $0x150] ss:$8 sps:$4 sm:$0xff]   ;;  %v2162_v41 = vld [vmem:[%s2755_s0 + $0x64] ss:$8 sps:$4 sm:$0xff]   ;;  %v2166_v43 = vld [vmem:[%s2755_s0 + $0x60] ss:$8 sps:$4 sm:$0xff]  }
   0xf   :  { %670 = vmatprep.subr.bf16.mxu0 %v2222_v0  ;;  %2081 = vmatprep.subr.bf16.mxu1 %v2222_v0  ;;  %v2164_v42 = vld [vmem:[%s2755_s0 + $0x164] ss:$8 sps:$4 sm:$0xff]   ;;  %v2167_v44 = vld [vmem:[%s2755_s0 + $0x160] ss:$8 sps:$4 sm:$0xff]   ;;  %v2168_v45 = vld [vmem:[%s2755_s0 + $0x74] ss:$8 sps:$4 sm:$0xff]  }
  0x10   :  { %v2170_v46 = vld [vmem:[%s2755_s0 + $0x174] ss:$8 sps:$4 sm:$0xff]   ;;  %v2172_v47 = vld [vmem:[%s2755_s0 + $0x70] ss:$8 sps:$4 sm:$0xff]   ;;  %v2174_v49 = vld [vmem:[%s2755_s0 + $0x84] ss:$8 sps:$4 sm:$0xff]  }
  0x11   :  { %v2173_v48 = vld [vmem:[%s2755_s0 + $0x170] ss:$8 sps:$4 sm:$0xff]   ;;  %v2176_v50 = vld [vmem:[%s2755_s0 + $0x184] ss:$8 sps:$4 sm:$0xff]   ;;  %v2178_v51 = vld [vmem:[%s2755_s0 + $0x80] ss:$8 sps:$4 sm:$0xff]  }
  0x12   :  { %671 = vmatpush1.bf16.msra.mxu0 %v2114_v5  ;;  %2097 = vmatpush1.bf16.msra.mxu1 %v2114_v5  ;;  %v2179_v52 = vld [vmem:[%s2755_s0 + $0x180] ss:$8 sps:$4 sm:$0xff]   ;;  %v2180_v53 = vld [vmem:[%s2755_s0 + $0x94] ss:$8 sps:$4 sm:$0xff]   ;;  %v2184_v55 = vld [vmem:[%s2755_s0 + $0x90] ss:$8 sps:$4 sm:$0xff]  }
  0x13   :  { %672 = vmatprep.subr.bf16.mxu0 %v2222_v0  ;;  %2082 = vmatprep.subr.bf16.mxu1 %v2222_v0  ;;  %v2182_v54 = vld [vmem:[%s2755_s0 + $0x194] ss:$8 sps:$4 sm:$0xff]   ;;  %v2185_v56 = vld [vmem:[%s2755_s0 + $0x190] ss:$8 sps:$4 sm:$0xff]   ;;  %v2186_v57 = vld [vmem:[%s2755_s0 + $0xa4] ss:$8 sps:$4 sm:$0xff]  }
  0x14   :  { %v2188_v58 = vld [vmem:[%s2755_s0 + $0x1a4] ss:$8 sps:$4 sm:$0xff]   ;;  %v2190_v59 = vld [vmem:[%s2755_s0 + $0xa0] ss:$8 sps:$4 sm:$0xff]   ;;  %v2192_v61 = vld [vmem:[%s2755_s0 + $0xb4] ss:$8 sps:$4 sm:$0xff]  }
  0x15   :  { %v2191_v60 = vld [vmem:[%s2755_s0 + $0x1a0] ss:$8 sps:$4 sm:$0xff]   ;;  %v2194_v62 = vld [vmem:[%s2755_s0 + $0x1b4] ss:$8 sps:$4 sm:$0xff]   ;;  %v2196_v63 = vld [vmem:[%s2755_s0 + $0xb0] ss:$8 sps:$4 sm:$0xff]  }
  0x16   :  { %673 = vmatpush1.bf16.msra.mxu0 %v2115_v7  ;;  %2098 = vmatpush1.bf16.msra.mxu1 %v2115_v7  ;;  %v2198_v1 = vld [vmem:[%s2755_s0 + $0xc4] ss:$8 sps:$4 sm:$0xff]   ;;  %v2202_v3 = vld [vmem:[%s2755_s0 + $0xc0] ss:$8 sps:$4 sm:$0xff]   ;;  %v2204_v5 = vld [vmem:[%s2755_s0 + $0xd4] ss:$8 sps:$4 sm:$0xff]  }
  0x17   :  { %674 = vmatprep.subr.bf16.mxu0 %v2222_v0  ;;  %2083 = vmatprep.subr.bf16.mxu1 %v2222_v0  ;;  %v2200_v2 = vld [vmem:[%s2755_s0 + $0x1c4] ss:$8 sps:$4 sm:$0xff]   ;;  %v2203_v4 = vld [vmem:[%s2755_s0 + $0x1c0] ss:$8 sps:$4 sm:$0xff]   ;;  %v2206_v6 = vld [vmem:[%s2755_s0 + $0x1d4] ss:$8 sps:$4 sm:$0xff]  }
  0x18   :  { %v2208_v7 = vld [vmem:[%s2755_s0 + $0xd0] ss:$8 sps:$4 sm:$0xff]  }
  0x19   :  { %v2209_v8 = vld [vmem:[%s2755_s0 + $0x1d0] ss:$8 sps:$4 sm:$0xff]  }
  0x1a   :  { %675 = vmatpush1.bf16.msra.mxu0 %v2116_v9  ;;  %2099 = vmatpush1.bf16.msra.mxu1 %v2116_v9  ;;  %v2210_v9 = vld [vmem:[%s2755_s0 + $0xe4] ss:$8 sps:$4 sm:$0xff]  }
  0x1b   :  { %676 = vmatprep.subr.bf16.mxu0 %v2222_v0  ;;  %2084 = vmatprep.subr.bf16.mxu1 %v2222_v0 }
  0x1e   :  { %677 = vmatpush1.bf16.msra.mxu0 %v2117_v10  ;;  %2100 = vmatpush1.bf16.msra.mxu1 %v2117_v10  ;;  %v2212_v10 = vld [vmem:[%s2755_s0 + $0x1e4] ss:$8 sps:$4 sm:$0xff]  }
  0x1f   :  { %678 = vmatprep.subr.bf16.mxu0 %v2222_v0  ;;  %2085 = vmatprep.subr.bf16.mxu1 %v2222_v0 }
  0x22   :  { %679 = vmatpush2.bf16.msra.mxu0 %v2118_v11  ;;  %2101 = vmatpush2.bf16.msra.mxu1 %v2118_v11  ;;  %v2214_v11 = vld [vmem:[%s2755_s0 + $0xe0] ss:$8 sps:$4 sm:$0xff]  }
  0x23   :  { %680 = vmatprep.subr.bf16.mxu0 %v2222_v0  ;;  %2086 = vmatprep.subr.bf16.mxu1 %v2222_v0 }
  0x26   :  { %681 = vmatpush2.bf16.msra.mxu0 %v2119_v12  ;;  %2102 = vmatpush2.bf16.msra.mxu1 %v2119_v12  ;;  %v2215_v12 = vld [vmem:[%s2755_s0 + $0x1e0] ss:$8 sps:$4 sm:$0xff]  }
  0x27   :  { %682 = vmatprep.subr.bf16.mxu0 %v2222_v0  ;;  %2087 = vmatprep.subr.bf16.mxu1 %v2222_v0 }
  0x2a   :  { %683 = vmatpush2.bf16.msra.mxu0 %v2120_v13  ;;  %2103 = vmatpush2.bf16.msra.mxu1 %v2120_v13  ;;  %v2216_v13 = vld [vmem:[%s2755_s0 + $0xf4] ss:$8 sps:$4 sm:$0xff]  }
  0x2b   :  { %684 = vmatprep.subr.bf16.mxu0 %v2222_v0  ;;  %2088 = vmatprep.subr.bf16.mxu1 %v2222_v0 }
  0x2e   :  { %685 = vmatpush2.bf16.msra.mxu0 %v2121_v14  ;;  %2104 = vmatpush2.bf16.msra.mxu1 %v2121_v14  ;;  %v2218_v14 = vld [vmem:[%s2755_s0 + $0x1f4] ss:$8 sps:$4 sm:$0xff]  }
  0x2f   :  { %686 = vmatprep.subr.bf16.mxu0 %v2222_v0  ;;  %2089 = vmatprep.subr.bf16.mxu1 %v2222_v0 }
  0x32   :  { %687 = vmatpush2.bf16.msra.mxu0 %v2122_v15  ;;  %2105 = vmatpush2.bf16.msra.mxu1 %v2122_v15  ;;  %v2220_v15 = vld [vmem:[%s2755_s0 + $0xf0] ss:$8 sps:$4 sm:$0xff]  }
  0x33   :  { %688 = vmatprep.subr.bf16.mxu0 %v2222_v0  ;;  %2090 = vmatprep.subr.bf16.mxu1 %v2222_v0 }
  0x36   :  { %689 = vmatpush2.bf16.msra.mxu0 %v2123_v16  ;;  %2106 = vmatpush2.bf16.msra.mxu1 %v2123_v16  ;;  %v2221_v16 = vld [vmem:[%s2755_s0 + $0x1f0] ss:$8 sps:$4 sm:$0xff]  }
  0x37   :  { %690 = vmatprep.subr.bf16.mxu0 %v2222_v0  ;;  %2091 = vmatprep.subr.bf16.mxu1 %v2222_v0 }
  0x3a   :  { %691 = vmatpush2.bf16.msra.mxu0 %v2124_v17  ;;  %2107 = vmatpush2.bf16.msra.mxu1 %v2124_v17  ;;  %v2523_v17 = vld [vmem:[%s2756_s2] ss:$0 sm:$0xff] }
  0x3b   :  { %692 = vmatprep.subr.bf16.mxu0 %v2222_v0  ;;  %2092 = vmatprep.subr.bf16.mxu1 %v2222_v0  ;;  %v2197_v0 = vld [vmem:[%s2755_s0 + $0x1b0] ss:$8 sps:$4 sm:$0xff]  }
  0x3e   :  { %693 = vmatpush2.bf16.msra.mxu0 %v2125_v18  ;;  %2108 = vmatpush2.bf16.msra.mxu1 %v2125_v18 }
  0x41   :  { %695 = vmatmul.mubr.bf16.vlgmr.msra.gmra.mxu0 %v2126_v19  ;;  %823 = vmatmul.mubr.bf16.vlgmr.msra.gmra.mxu1 %v2129_v20 }
  0x42   :  { %702 = vmatprep.mubr.bf16.mxu0 %v2132_v21  ;;  %830 = vmatprep.mubr.bf16.mxu1 %v2134_v22  ;;  %v2529_v21 = vld [vmem:[%s2757_s3] ss:$0 sm:$0xff] }
  0x49   :  { %703 = vmatmul.mubr.bf16.gmra.mxu0 %v2136_v23  ;;  %831 = vmatmul.mubr.bf16.gmra.mxu1 %v2137_v24 }
  0x4a   :  { %710 = vmatprep.mubr.bf16.mxu0 %v2138_v25  ;;  %838 = vmatprep.mubr.bf16.mxu1 %v2140_v26 }
  0x51   :  { %711 = vmatmul.mubr.bf16.gmra.mxu0 %v2142_v27  ;;  %839 = vmatmul.mubr.bf16.gmra.mxu1 %v2143_v28 }
  0x52   :  { %718 = vmatprep.mubr.bf16.mxu0 %v2144_v29  ;;  %846 = vmatprep.mubr.bf16.mxu1 %v2146_v30 }
  0x59   :  { %719 = vmatmul.mubr.bf16.gmra.mxu0 %v2148_v31  ;;  %847 = vmatmul.mubr.bf16.gmra.mxu1 %v2149_v32 }
  0x5a   :  { %726 = vmatprep.mubr.bf16.mxu0 %v2150_v33  ;;  %854 = vmatprep.mubr.bf16.mxu1 %v2152_v34 }
  0x61   :  { %727 = vmatmul.mubr.bf16.gmra.mxu0 %v2154_v35  ;;  %855 = vmatmul.mubr.bf16.gmra.mxu1 %v2155_v36 }
  0x62   :  { %734 = vmatprep.mubr.bf16.mxu0 %v2156_v37  ;;  %862 = vmatprep.mubr.bf16.mxu1 %v2158_v38 }
  0x69   :  { %735 = vmatmul.mubr.bf16.gmra.mxu0 %v2160_v39  ;;  %863 = vmatmul.mubr.bf16.gmra.mxu1 %v2161_v40 }
  0x6a   :  { %742 = vmatprep.mubr.bf16.mxu0 %v2162_v41  ;;  %870 = vmatprep.mubr.bf16.mxu1 %v2164_v42 }
  0x71   :  { %743 = vmatmul.mubr.bf16.gmra.mxu0 %v2166_v43  ;;  %871 = vmatmul.mubr.bf16.gmra.mxu1 %v2167_v44 }
  0x72   :  { %750 = vmatprep.mubr.bf16.mxu0 %v2168_v45  ;;  %878 = vmatprep.mubr.bf16.mxu1 %v2170_v46 }
  0x79   :  { %751 = vmatmul.mubr.bf16.gmra.mxu0 %v2172_v47  ;;  %879 = vmatmul.mubr.bf16.gmra.mxu1 %v2173_v48 }
  0x7a   :  { %758 = vmatprep.mubr.bf16.mxu0 %v2174_v49  ;;  %886 = vmatprep.mubr.bf16.mxu1 %v2176_v50 }
  0x81   :  { %759 = vmatmul.mubr.bf16.gmra.mxu0 %v2178_v51  ;;  %887 = vmatmul.mubr.bf16.gmra.mxu1 %v2179_v52 }
  0x82   :  { %766 = vmatprep.mubr.bf16.mxu0 %v2180_v53  ;;  %894 = vmatprep.mubr.bf16.mxu1 %v2182_v54 }
  0x89   :  { %767 = vmatmul.mubr.bf16.gmra.mxu0 %v2184_v55  ;;  %895 = vmatmul.mubr.bf16.gmra.mxu1 %v2185_v56 }
  0x8a   :  { %774 = vmatprep.mubr.bf16.mxu0 %v2186_v57  ;;  %902 = vmatprep.mubr.bf16.mxu1 %v2188_v58 }
  0x91   :  { %775 = vmatmul.mubr.bf16.gmra.mxu0 %v2190_v59  ;;  %903 = vmatmul.mubr.bf16.gmra.mxu1 %v2191_v60 }
  0x92   :  { %782 = vmatprep.mubr.bf16.mxu0 %v2192_v61  ;;  %910 = vmatprep.mubr.bf16.mxu1 %v2194_v62 }
  0x99   :  { %783 = vmatmul.mubr.bf16.gmra.mxu0 %v2196_v63  ;;  %911 = vmatmul.mubr.bf16.gmra.mxu1 %v2197_v0 }
  0x9a   :  { %790 = vmatprep.mubr.bf16.mxu0 %v2198_v1  ;;  %918 = vmatprep.mubr.bf16.mxu1 %v2200_v2 }
  0xa1   :  { %791 = vmatmul.mubr.bf16.gmra.mxu0 %v2202_v3  ;;  %919 = vmatmul.mubr.bf16.gmra.mxu1 %v2203_v4 }
  0xa2   :  { %798 = vmatprep.mubr.bf16.mxu0 %v2204_v5  ;;  %926 = vmatprep.mubr.bf16.mxu1 %v2206_v6 }
  0xa9   :  { %799 = vmatmul.mubr.bf16.gmra.mxu0 %v2208_v7  ;;  %927 = vmatmul.mubr.bf16.gmra.mxu1 %v2209_v8 }
  0xaa   :  { %806 = vmatprep.mubr.bf16.mxu0 %v2210_v9  ;;  %934 = vmatprep.mubr.bf16.mxu1 %v2212_v10 }
  0xb1   :  { %807 = vmatmul.mubr.bf16.gmra.mxu0 %v2214_v11  ;;  %935 = vmatmul.mubr.bf16.gmra.mxu1 %v2215_v12 }
  0xb2   :  { %814 = vmatprep.mubr.bf16.mxu0 %v2216_v13  ;;  %942 = vmatprep.mubr.bf16.mxu1 %v2218_v14 }
  0xb9   :  { %815 = vmatmul.mubr.bf16.gmra.mxu0 %v2220_v15  ;;  %943 = vmatmul.mubr.bf16.gmra.mxu1 %v2221_v16 }
 0x101   :  { %v696_v18 = vpop.f32.mrf.mxu0  ;;  %v824_v19 = vpop.f32.mrf.mxu1 }
 0x102   :  { %v1153_v20 = vmul.f32 %v2523_v17, %v696_v18  ;;  %v1185_v22 = vmul.f32 %v2523_v17, %v824_v19 }
 0x103   :  { %v698_v23 = vpop.f32.mrf.mxu0  ;;  %v826_v24 = vpop.f32.mrf.mxu1 }
 0x104   :  { %v1224_v25 = vadd.f32 %v2529_v21, %v1153_v20  ;;  %v1256_v26 = vadd.f32 %v2529_v21, %v1185_v22 }
 0x105   :  { %v699_v27 = vpop.f32.mrf.mxu0  ;;  %v827_v28 = vpop.f32.mrf.mxu1 }
 0x106   :  { %v1154_v29 = vmul.f32 %v2523_v17, %v699_v27  ;;  %v1186_v30 = vmul.f32 %v2523_v17, %v827_v28  ;;  %v1288_v35 = vmax.f32 %v1224_v25, 0.0  ;;  %v1320_v36 = vmax.f32 %v1256_v26, 0.0 }
 0x107   :  { %v701_v31 = vpop.f32.mrf.mxu0  ;;  %v829_v32 = vpop.f32.mrf.mxu1 }
 0x108   :  { %v1225_v33 = vadd.f32 %v2529_v21, %v1154_v29  ;;  %v1257_v34 = vadd.f32 %v2529_v21, %v1186_v30 }
 0x109   :  { %v704_v37 = vpop.f32.mrf.mxu0  ;;  %v832_v38 = vpop.f32.mrf.mxu1 }
 0x10a   :  { %v1289_v39 = vmax.f32 %v1225_v33, 0.0  ;;  %v1321_v40 = vmax.f32 %v1257_v34, 0.0  ;;  %v1155_v41 = vmul.f32 %v2523_v17, %v704_v37  ;;  %v1187_v42 = vmul.f32 %v2523_v17, %v832_v38 }
 0x10b   :  { %v706_v43 = vpop.f32.mrf.mxu0  ;;  %v834_v44 = vpop.f32.mrf.mxu1 }
 0x10c   :  { %v1889_v45 = vpack.c.bf16 %v1289_v39, %v1288_v35  ;;  %v1969_v46 = vpack.c.bf16 %v1321_v40, %v1320_v36  ;;  %v1226_v47 = vadd.f32 %v2529_v21, %v1155_v41  ;;  %v1258_v48 = vadd.f32 %v2529_v21, %v1187_v42 }
 0x10d   :  { %v707_v49 = vpop.f32.mrf.mxu0  ;;  %v835_v50 = vpop.f32.mrf.mxu1 }
 0x10e   :  { %1890 = vst [vmem:[%s2758_s4] sm:$0xff] %v1889_v45   ;;  %2061 = vst [vmem:[%s2758_s4 + $0x80] sm:$0xff] %v1969_v46   ;;  %v1156_v51 = vmul.f32 %v2523_v17, %v707_v49  ;;  %v1188_v52 = vmul.f32 %v2523_v17, %v835_v50  ;;  %v1290_v57 = vmax.f32 %v1226_v47, 0.0  ;;  %v1322_v58 = vmax.f32 %v1258_v48, 0.0 }
 0x10f   :  { %v709_v53 = vpop.f32.mrf.mxu0  ;;  %v837_v54 = vpop.f32.mrf.mxu1 }
 0x110   :  { %v1227_v55 = vadd.f32 %v2529_v21, %v1156_v51  ;;  %v1259_v56 = vadd.f32 %v2529_v21, %v1188_v52 }
 0x111   :  { %v712_v59 = vpop.f32.mrf.mxu0  ;;  %v840_v60 = vpop.f32.mrf.mxu1 }
 0x112   :  { %v1291_v61 = vmax.f32 %v1227_v55, 0.0  ;;  %v1323_v62 = vmax.f32 %v1259_v56, 0.0  ;;  %v1157_v63 = vmul.f32 %v2523_v17, %v712_v59  ;;  %v1189_v0 = vmul.f32 %v2523_v17, %v840_v60 }
 0x113   :  { %v714_v1 = vpop.f32.mrf.mxu0  ;;  %v842_v2 = vpop.f32.mrf.mxu1 }
 0x114   :  { %v1894_v3 = vpack.c.bf16 %v1291_v61, %v1290_v57  ;;  %v1974_v4 = vpack.c.bf16 %v1323_v62, %v1322_v58  ;;  %v1228_v5 = vadd.f32 %v2529_v21, %v1157_v63  ;;  %v1260_v6 = vadd.f32 %v2529_v21, %v1189_v0 }
 0x115   :  { %v715_v7 = vpop.f32.mrf.mxu0  ;;  %v843_v8 = vpop.f32.mrf.mxu1 }
 0x116   :  { %2046 = vst [vmem:[%s2758_s4 + $0x8] sm:$0xff] %v1894_v3   ;;  %2062 = vst [vmem:[%s2758_s4 + $0x88] sm:$0xff] %v1974_v4   ;;  %v1158_v9 = vmul.f32 %v2523_v17, %v715_v7  ;;  %v1190_v10 = vmul.f32 %v2523_v17, %v843_v8  ;;  %v1292_v15 = vmax.f32 %v1228_v5, 0.0  ;;  %v1324_v16 = vmax.f32 %v1260_v6, 0.0 }
 0x117   :  { %v717_v11 = vpop.f32.mrf.mxu0  ;;  %v845_v12 = vpop.f32.mrf.mxu1 }
 0x118   :  { %v1229_v13 = vadd.f32 %v2529_v21, %v1158_v9  ;;  %v1261_v14 = vadd.f32 %v2529_v21, %v1190_v10 }
 0x119   :  { %v720_v18 = vpop.f32.mrf.mxu0  ;;  %v848_v19 = vpop.f32.mrf.mxu1 }
 0x11a   :  { %v1293_v20 = vmax.f32 %v1229_v13, 0.0  ;;  %v1325_v22 = vmax.f32 %v1261_v14, 0.0  ;;  %v1159_v23 = vmul.f32 %v2523_v17, %v720_v18  ;;  %v1191_v24 = vmul.f32 %v2523_v17, %v848_v19 }
 0x11b   :  { %v722_v25 = vpop.f32.mrf.mxu0  ;;  %v850_v26 = vpop.f32.mrf.mxu1 }
 0x11c   :  { %v1899_v27 = vpack.c.bf16 %v1293_v20, %v1292_v15  ;;  %v1979_v28 = vpack.c.bf16 %v1325_v22, %v1324_v16  ;;  %v1230_v29 = vadd.f32 %v2529_v21, %v1159_v23  ;;  %v1262_v30 = vadd.f32 %v2529_v21, %v1191_v24 }
 0x11d   :  { %v723_v31 = vpop.f32.mrf.mxu0  ;;  %v851_v32 = vpop.f32.mrf.mxu1 }
 0x11e   :  { %2047 = vst [vmem:[%s2758_s4 + $0x10] sm:$0xff] %v1899_v27   ;;  %2063 = vst [vmem:[%s2758_s4 + $0x90] sm:$0xff] %v1979_v28   ;;  %v1160_v33 = vmul.f32 %v2523_v17, %v723_v31  ;;  %v1192_v34 = vmul.f32 %v2523_v17, %v851_v32  ;;  %v1294_v39 = vmax.f32 %v1230_v29, 0.0  ;;  %v1326_v40 = vmax.f32 %v1262_v30, 0.0 }
 0x11f   :  { %v725_v35 = vpop.f32.mrf.mxu0  ;;  %v853_v36 = vpop.f32.mrf.mxu1 }
 0x120   :  { %v1231_v37 = vadd.f32 %v2529_v21, %v1160_v33  ;;  %v1263_v38 = vadd.f32 %v2529_v21, %v1192_v34 }
 0x121   :  { %v728_v41 = vpop.f32.mrf.mxu0  ;;  %v856_v42 = vpop.f32.mrf.mxu1 }
 0x122   :  { %v1295_v43 = vmax.f32 %v1231_v37, 0.0  ;;  %v1327_v44 = vmax.f32 %v1263_v38, 0.0  ;;  %v1161_v45 = vmul.f32 %v2523_v17, %v728_v41  ;;  %v1193_v46 = vmul.f32 %v2523_v17, %v856_v42 }
 0x123   :  { %v730_v47 = vpop.f32.mrf.mxu0  ;;  %v858_v48 = vpop.f32.mrf.mxu1 }
 0x124   :  { %v1904_v49 = vpack.c.bf16 %v1295_v43, %v1294_v39  ;;  %v1984_v50 = vpack.c.bf16 %v1327_v44, %v1326_v40  ;;  %v1232_v51 = vadd.f32 %v2529_v21, %v1161_v45  ;;  %v1264_v52 = vadd.f32 %v2529_v21, %v1193_v46 }
 0x125   :  { %v731_v53 = vpop.f32.mrf.mxu0  ;;  %v859_v54 = vpop.f32.mrf.mxu1 }
 0x126   :  { %2048 = vst [vmem:[%s2758_s4 + $0x18] sm:$0xff] %v1904_v49   ;;  %2064 = vst [vmem:[%s2758_s4 + $0x98] sm:$0xff] %v1984_v50   ;;  %v1162_v55 = vmul.f32 %v2523_v17, %v731_v53  ;;  %v1194_v56 = vmul.f32 %v2523_v17, %v859_v54  ;;  %v1296_v61 = vmax.f32 %v1232_v51, 0.0  ;;  %v1328_v62 = vmax.f32 %v1264_v52, 0.0 }
 0x127   :  { %v733_v57 = vpop.f32.mrf.mxu0  ;;  %v861_v58 = vpop.f32.mrf.mxu1 }
 0x128   :  { %v1233_v59 = vadd.f32 %v2529_v21, %v1162_v55  ;;  %v1265_v60 = vadd.f32 %v2529_v21, %v1194_v56 }
 0x129   :  { %v736_v63 = vpop.f32.mrf.mxu0  ;;  %v864_v0 = vpop.f32.mrf.mxu1 }
 0x12a   :  { %v1297_v1 = vmax.f32 %v1233_v59, 0.0  ;;  %v1329_v2 = vmax.f32 %v1265_v60, 0.0  ;;  %v1163_v3 = vmul.f32 %v2523_v17, %v736_v63  ;;  %v1195_v4 = vmul.f32 %v2523_v17, %v864_v0 }
 0x12b   :  { %v738_v5 = vpop.f32.mrf.mxu0  ;;  %v866_v6 = vpop.f32.mrf.mxu1 }
 0x12c   :  { %v1909_v7 = vpack.c.bf16 %v1297_v1, %v1296_v61  ;;  %v1989_v8 = vpack.c.bf16 %v1329_v2, %v1328_v62  ;;  %v1234_v9 = vadd.f32 %v2529_v21, %v1163_v3  ;;  %v1266_v10 = vadd.f32 %v2529_v21, %v1195_v4 }
 0x12d   :  { %v739_v11 = vpop.f32.mrf.mxu0  ;;  %v867_v12 = vpop.f32.mrf.mxu1 }
 0x12e   :  { %2049 = vst [vmem:[%s2758_s4 + $0x20] sm:$0xff] %v1909_v7   ;;  %2065 = vst [vmem:[%s2758_s4 + $0xa0] sm:$0xff] %v1989_v8   ;;  %v1164_v13 = vmul.f32 %v2523_v17, %v739_v11  ;;  %v1196_v14 = vmul.f32 %v2523_v17, %v867_v12  ;;  %v1298_v20 = vmax.f32 %v1234_v9, 0.0  ;;  %v1330_v22 = vmax.f32 %v1266_v10, 0.0 }
 0x12f   :  { %v741_v15 = vpop.f32.mrf.mxu0  ;;  %v869_v16 = vpop.f32.mrf.mxu1 }
 0x130   :  { %v1235_v18 = vadd.f32 %v2529_v21, %v1164_v13  ;;  %v1267_v19 = vadd.f32 %v2529_v21, %v1196_v14 }
 0x131   :  { %v744_v23 = vpop.f32.mrf.mxu0  ;;  %v872_v24 = vpop.f32.mrf.mxu1 }
 0x132   :  { %v1299_v25 = vmax.f32 %v1235_v18, 0.0  ;;  %v1331_v26 = vmax.f32 %v1267_v19, 0.0  ;;  %v1165_v27 = vmul.f32 %v2523_v17, %v744_v23  ;;  %v1197_v28 = vmul.f32 %v2523_v17, %v872_v24 }
 0x133   :  { %v746_v29 = vpop.f32.mrf.mxu0  ;;  %v874_v30 = vpop.f32.mrf.mxu1 }
 0x134   :  { %v1914_v31 = vpack.c.bf16 %v1299_v25, %v1298_v20  ;;  %v1994_v32 = vpack.c.bf16 %v1331_v26, %v1330_v22  ;;  %v1236_v33 = vadd.f32 %v2529_v21, %v1165_v27  ;;  %v1268_v34 = vadd.f32 %v2529_v21, %v1197_v28 }
 0x135   :  { %v747_v35 = vpop.f32.mrf.mxu0  ;;  %v875_v36 = vpop.f32.mrf.mxu1 }
 0x136   :  { %2050 = vst [vmem:[%s2758_s4 + $0x28] sm:$0xff] %v1914_v31   ;;  %2066 = vst [vmem:[%s2758_s4 + $0xa8] sm:$0xff] %v1994_v32   ;;  %v1166_v37 = vmul.f32 %v2523_v17, %v747_v35  ;;  %v1198_v38 = vmul.f32 %v2523_v17, %v875_v36  ;;  %v1300_v43 = vmax.f32 %v1236_v33, 0.0  ;;  %v1332_v44 = vmax.f32 %v1268_v34, 0.0 }
 0x137   :  { %v749_v39 = vpop.f32.mrf.mxu0  ;;  %v877_v40 = vpop.f32.mrf.mxu1 }
 0x138   :  { %v1237_v41 = vadd.f32 %v2529_v21, %v1166_v37  ;;  %v1269_v42 = vadd.f32 %v2529_v21, %v1198_v38 }
 0x139   :  { %v752_v45 = vpop.f32.mrf.mxu0  ;;  %v880_v46 = vpop.f32.mrf.mxu1 }
 0x13a   :  { %v1301_v47 = vmax.f32 %v1237_v41, 0.0  ;;  %v1333_v48 = vmax.f32 %v1269_v42, 0.0  ;;  %v1167_v49 = vmul.f32 %v2523_v17, %v752_v45  ;;  %v1199_v50 = vmul.f32 %v2523_v17, %v880_v46 }
 0x13b   :  { %v754_v51 = vpop.f32.mrf.mxu0  ;;  %v882_v52 = vpop.f32.mrf.mxu1 }
 0x13c   :  { %v1919_v53 = vpack.c.bf16 %v1301_v47, %v1300_v43  ;;  %v1999_v54 = vpack.c.bf16 %v1333_v48, %v1332_v44  ;;  %v1238_v55 = vadd.f32 %v2529_v21, %v1167_v49  ;;  %v1270_v56 = vadd.f32 %v2529_v21, %v1199_v50 }
 0x13d   :  { %v755_v57 = vpop.f32.mrf.mxu0  ;;  %v883_v58 = vpop.f32.mrf.mxu1 }
 0x13e   :  { %2051 = vst [vmem:[%s2758_s4 + $0x30] sm:$0xff] %v1919_v53   ;;  %2067 = vst [vmem:[%s2758_s4 + $0xb0] sm:$0xff] %v1999_v54   ;;  %v1168_v59 = vmul.f32 %v2523_v17, %v755_v57  ;;  %v1200_v60 = vmul.f32 %v2523_v17, %v883_v58  ;;  %v1302_v1 = vmax.f32 %v1238_v55, 0.0  ;;  %v1334_v2 = vmax.f32 %v1270_v56, 0.0 }
 0x13f   :  { %v757_v61 = vpop.f32.mrf.mxu0  ;;  %v885_v62 = vpop.f32.mrf.mxu1 }
 0x140   :  { %v1239_v63 = vadd.f32 %v2529_v21, %v1168_v59  ;;  %v1271_v0 = vadd.f32 %v2529_v21, %v1200_v60 }
 0x141   :  { %v760_v3 = vpop.f32.mrf.mxu0  ;;  %v888_v4 = vpop.f32.mrf.mxu1 }
 0x142   :  { %v1303_v5 = vmax.f32 %v1239_v63, 0.0  ;;  %v1335_v6 = vmax.f32 %v1271_v0, 0.0  ;;  %v1169_v7 = vmul.f32 %v2523_v17, %v760_v3  ;;  %v1201_v8 = vmul.f32 %v2523_v17, %v888_v4 }
 0x143   :  { %v762_v9 = vpop.f32.mrf.mxu0  ;;  %v890_v10 = vpop.f32.mrf.mxu1 }
 0x144   :  { %v1924_v11 = vpack.c.bf16 %v1303_v5, %v1302_v1  ;;  %v2004_v12 = vpack.c.bf16 %v1335_v6, %v1334_v2  ;;  %v1240_v13 = vadd.f32 %v2529_v21, %v1169_v7  ;;  %v1272_v14 = vadd.f32 %v2529_v21, %v1201_v8 }
 0x145   :  { %v763_v15 = vpop.f32.mrf.mxu0  ;;  %v891_v16 = vpop.f32.mrf.mxu1 }
 0x146   :  { %2052 = vst [vmem:[%s2758_s4 + $0x38] sm:$0xff] %v1924_v11   ;;  %2068 = vst [vmem:[%s2758_s4 + $0xb8] sm:$0xff] %v2004_v12   ;;  %v1170_v18 = vmul.f32 %v2523_v17, %v763_v15  ;;  %v1202_v19 = vmul.f32 %v2523_v17, %v891_v16  ;;  %v1304_v25 = vmax.f32 %v1240_v13, 0.0  ;;  %v1336_v26 = vmax.f32 %v1272_v14, 0.0 }
 0x147   :  { %v765_v20 = vpop.f32.mrf.mxu0  ;;  %v893_v22 = vpop.f32.mrf.mxu1 }
 0x148   :  { %v1241_v23 = vadd.f32 %v2529_v21, %v1170_v18  ;;  %v1273_v24 = vadd.f32 %v2529_v21, %v1202_v19 }
 0x149   :  { %v768_v27 = vpop.f32.mrf.mxu0  ;;  %v896_v28 = vpop.f32.mrf.mxu1 }
 0x14a   :  { %v1305_v29 = vmax.f32 %v1241_v23, 0.0  ;;  %v1337_v30 = vmax.f32 %v1273_v24, 0.0  ;;  %v1171_v31 = vmul.f32 %v2523_v17, %v768_v27  ;;  %v1203_v32 = vmul.f32 %v2523_v17, %v896_v28 }
 0x14b   :  { %v770_v33 = vpop.f32.mrf.mxu0  ;;  %v898_v34 = vpop.f32.mrf.mxu1 }
 0x14c   :  { %v1929_v35 = vpack.c.bf16 %v1305_v29, %v1304_v25  ;;  %v2009_v36 = vpack.c.bf16 %v1337_v30, %v1336_v26  ;;  %v1242_v37 = vadd.f32 %v2529_v21, %v1171_v31  ;;  %v1274_v38 = vadd.f32 %v2529_v21, %v1203_v32 }
 0x14d   :  { %v771_v39 = vpop.f32.mrf.mxu0  ;;  %v899_v40 = vpop.f32.mrf.mxu1 }
 0x14e   :  { %2053 = vst [vmem:[%s2758_s4 + $0x40] sm:$0xff] %v1929_v35   ;;  %2069 = vst [vmem:[%s2758_s4 + $0xc0] sm:$0xff] %v2009_v36   ;;  %v1172_v41 = vmul.f32 %v2523_v17, %v771_v39  ;;  %v1204_v42 = vmul.f32 %v2523_v17, %v899_v40  ;;  %v1306_v47 = vmax.f32 %v1242_v37, 0.0  ;;  %v1338_v48 = vmax.f32 %v1274_v38, 0.0 }
 0x14f   :  { %v773_v43 = vpop.f32.mrf.mxu0  ;;  %v901_v44 = vpop.f32.mrf.mxu1 }
 0x150   :  { %v1243_v45 = vadd.f32 %v2529_v21, %v1172_v41  ;;  %v1275_v46 = vadd.f32 %v2529_v21, %v1204_v42 }
 0x151   :  { %v776_v49 = vpop.f32.mrf.mxu0  ;;  %v904_v50 = vpop.f32.mrf.mxu1 }
 0x152   :  { %v1307_v51 = vmax.f32 %v1243_v45, 0.0  ;;  %v1339_v52 = vmax.f32 %v1275_v46, 0.0  ;;  %v1173_v53 = vmul.f32 %v2523_v17, %v776_v49  ;;  %v1205_v54 = vmul.f32 %v2523_v17, %v904_v50 }
 0x153   :  { %v778_v55 = vpop.f32.mrf.mxu0  ;;  %v906_v56 = vpop.f32.mrf.mxu1 }
 0x154   :  { %v1934_v57 = vpack.c.bf16 %v1307_v51, %v1306_v47  ;;  %v2014_v58 = vpack.c.bf16 %v1339_v52, %v1338_v48  ;;  %v1244_v59 = vadd.f32 %v2529_v21, %v1173_v53  ;;  %v1276_v60 = vadd.f32 %v2529_v21, %v1205_v54 }
 0x155   :  { %v779_v61 = vpop.f32.mrf.mxu0  ;;  %v907_v62 = vpop.f32.mrf.mxu1 }
 0x156   :  { %2054 = vst [vmem:[%s2758_s4 + $0x48] sm:$0xff] %v1934_v57   ;;  %2070 = vst [vmem:[%s2758_s4 + $0xc8] sm:$0xff] %v2014_v58   ;;  %v1174_v63 = vmul.f32 %v2523_v17, %v779_v61  ;;  %v1206_v0 = vmul.f32 %v2523_v17, %v907_v62  ;;  %v1308_v5 = vmax.f32 %v1244_v59, 0.0  ;;  %v1340_v6 = vmax.f32 %v1276_v60, 0.0 }
 0x157   :  { %v781_v1 = vpop.f32.mrf.mxu0  ;;  %v909_v2 = vpop.f32.mrf.mxu1 }
 0x158   :  { %v1245_v3 = vadd.f32 %v2529_v21, %v1174_v63  ;;  %v1277_v4 = vadd.f32 %v2529_v21, %v1206_v0 }
 0x159   :  { %v784_v7 = vpop.f32.mrf.mxu0  ;;  %v912_v8 = vpop.f32.mrf.mxu1 }
 0x15a   :  { %v1309_v9 = vmax.f32 %v1245_v3, 0.0  ;;  %v1341_v10 = vmax.f32 %v1277_v4, 0.0  ;;  %v1175_v11 = vmul.f32 %v2523_v17, %v784_v7  ;;  %v1207_v12 = vmul.f32 %v2523_v17, %v912_v8 }
 0x15b   :  { %v786_v13 = vpop.f32.mrf.mxu0  ;;  %v914_v14 = vpop.f32.mrf.mxu1 }
 0x15c   :  { %v1939_v15 = vpack.c.bf16 %v1309_v9, %v1308_v5  ;;  %v2019_v16 = vpack.c.bf16 %v1341_v10, %v1340_v6  ;;  %v1246_v18 = vadd.f32 %v2529_v21, %v1175_v11  ;;  %v1278_v19 = vadd.f32 %v2529_v21, %v1207_v12 }
 0x15d   :  { %v787_v20 = vpop.f32.mrf.mxu0  ;;  %v915_v22 = vpop.f32.mrf.mxu1 }
 0x15e   :  { %2055 = vst [vmem:[%s2758_s4 + $0x50] sm:$0xff] %v1939_v15   ;;  %2071 = vst [vmem:[%s2758_s4 + $0xd0] sm:$0xff] %v2019_v16   ;;  %v1176_v23 = vmul.f32 %v2523_v17, %v787_v20  ;;  %v1208_v24 = vmul.f32 %v2523_v17, %v915_v22  ;;  %v1310_v29 = vmax.f32 %v1246_v18, 0.0  ;;  %v1342_v30 = vmax.f32 %v1278_v19, 0.0 }
 0x15f   :  { %v789_v25 = vpop.f32.mrf.mxu0  ;;  %v917_v26 = vpop.f32.mrf.mxu1 }
 0x160   :  { %v1247_v27 = vadd.f32 %v2529_v21, %v1176_v23  ;;  %v1279_v28 = vadd.f32 %v2529_v21, %v1208_v24 }
 0x161   :  { %v792_v31 = vpop.f32.mrf.mxu0  ;;  %v920_v32 = vpop.f32.mrf.mxu1 }
 0x162   :  { %v1311_v33 = vmax.f32 %v1247_v27, 0.0  ;;  %v1343_v34 = vmax.f32 %v1279_v28, 0.0  ;;  %v1177_v35 = vmul.f32 %v2523_v17, %v792_v31  ;;  %v1209_v36 = vmul.f32 %v2523_v17, %v920_v32 }
 0x163   :  { %v794_v37 = vpop.f32.mrf.mxu0  ;;  %v922_v38 = vpop.f32.mrf.mxu1 }
 0x164   :  { %v1944_v39 = vpack.c.bf16 %v1311_v33, %v1310_v29  ;;  %v2024_v40 = vpack.c.bf16 %v1343_v34, %v1342_v30  ;;  %v1248_v41 = vadd.f32 %v2529_v21, %v1177_v35  ;;  %v1280_v42 = vadd.f32 %v2529_v21, %v1209_v36 }
 0x165   :  { %v795_v43 = vpop.f32.mrf.mxu0  ;;  %v923_v44 = vpop.f32.mrf.mxu1 }
 0x166   :  { %2056 = vst [vmem:[%s2758_s4 + $0x58] sm:$0xff] %v1944_v39   ;;  %2072 = vst [vmem:[%s2758_s4 + $0xd8] sm:$0xff] %v2024_v40   ;;  %v1178_v45 = vmul.f32 %v2523_v17, %v795_v43  ;;  %v1210_v46 = vmul.f32 %v2523_v17, %v923_v44  ;;  %v1312_v51 = vmax.f32 %v1248_v41, 0.0  ;;  %v1344_v52 = vmax.f32 %v1280_v42, 0.0 }
 0x167   :  { %v797_v47 = vpop.f32.mrf.mxu0  ;;  %v925_v48 = vpop.f32.mrf.mxu1 }
 0x168   :  { %v1249_v49 = vadd.f32 %v2529_v21, %v1178_v45  ;;  %v1281_v50 = vadd.f32 %v2529_v21, %v1210_v46 }
 0x169   :  { %v800_v53 = vpop.f32.mrf.mxu0  ;;  %v928_v54 = vpop.f32.mrf.mxu1 }
 0x16a   :  { %v1313_v55 = vmax.f32 %v1249_v49, 0.0  ;;  %v1345_v56 = vmax.f32 %v1281_v50, 0.0  ;;  %v1179_v57 = vmul.f32 %v2523_v17, %v800_v53  ;;  %v1211_v58 = vmul.f32 %v2523_v17, %v928_v54 }
 0x16b   :  { %v802_v59 = vpop.f32.mrf.mxu0  ;;  %v930_v60 = vpop.f32.mrf.mxu1 }
 0x16c   :  { %v1949_v61 = vpack.c.bf16 %v1313_v55, %v1312_v51  ;;  %v2029_v62 = vpack.c.bf16 %v1345_v56, %v1344_v52  ;;  %v1250_v63 = vadd.f32 %v2529_v21, %v1179_v57  ;;  %v1282_v0 = vadd.f32 %v2529_v21, %v1211_v58 }
 0x16d   :  { %v803_v1 = vpop.f32.mrf.mxu0  ;;  %v931_v2 = vpop.f32.mrf.mxu1 }
 0x16e   :  { %2057 = vst [vmem:[%s2758_s4 + $0x60] sm:$0xff] %v1949_v61   ;;  %2073 = vst [vmem:[%s2758_s4 + $0xe0] sm:$0xff] %v2029_v62   ;;  %v1180_v3 = vmul.f32 %v2523_v17, %v803_v1  ;;  %v1212_v4 = vmul.f32 %v2523_v17, %v931_v2  ;;  %v1314_v9 = vmax.f32 %v1250_v63, 0.0  ;;  %v1346_v10 = vmax.f32 %v1282_v0, 0.0 }
 0x16f   :  { %v805_v5 = vpop.f32.mrf.mxu0  ;;  %v933_v6 = vpop.f32.mrf.mxu1 }
 0x170   :  { %v1251_v7 = vadd.f32 %v2529_v21, %v1180_v3  ;;  %v1283_v8 = vadd.f32 %v2529_v21, %v1212_v4 }
 0x171   :  { %v808_v11 = vpop.f32.mrf.mxu0  ;;  %v936_v12 = vpop.f32.mrf.mxu1 }
 0x172   :  { %v1315_v13 = vmax.f32 %v1251_v7, 0.0  ;;  %v1347_v14 = vmax.f32 %v1283_v8, 0.0  ;;  %v1181_v15 = vmul.f32 %v2523_v17, %v808_v11  ;;  %v1213_v16 = vmul.f32 %v2523_v17, %v936_v12 }
 0x173   :  { %v810_v18 = vpop.f32.mrf.mxu0  ;;  %v938_v19 = vpop.f32.mrf.mxu1 }
 0x174   :  { %v1954_v20 = vpack.c.bf16 %v1315_v13, %v1314_v9  ;;  %v2034_v22 = vpack.c.bf16 %v1347_v14, %v1346_v10  ;;  %v1252_v23 = vadd.f32 %v2529_v21, %v1181_v15  ;;  %v1284_v24 = vadd.f32 %v2529_v21, %v1213_v16 }
 0x175   :  { %v811_v25 = vpop.f32.mrf.mxu0  ;;  %v939_v26 = vpop.f32.mrf.mxu1 }
 0x176   :  { %2058 = vst [vmem:[%s2758_s4 + $0x68] sm:$0xff] %v1954_v20   ;;  %2074 = vst [vmem:[%s2758_s4 + $0xe8] sm:$0xff] %v2034_v22   ;;  %v1182_v27 = vmul.f32 %v2523_v17, %v811_v25  ;;  %v1214_v28 = vmul.f32 %v2523_v17, %v939_v26  ;;  %v1316_v33 = vmax.f32 %v1252_v23, 0.0  ;;  %v1348_v34 = vmax.f32 %v1284_v24, 0.0 }
 0x177   :  { %v813_v29 = vpop.f32.mrf.mxu0  ;;  %v941_v30 = vpop.f32.mrf.mxu1 }
 0x178   :  { %v1253_v31 = vadd.f32 %v2529_v21, %v1182_v27  ;;  %v1285_v32 = vadd.f32 %v2529_v21, %v1214_v28 }
 0x179   :  { %v816_v35 = vpop.f32.mrf.mxu0  ;;  %v944_v36 = vpop.f32.mrf.mxu1 }
 0x17a   :  { %v1317_v37 = vmax.f32 %v1253_v31, 0.0  ;;  %v1349_v38 = vmax.f32 %v1285_v32, 0.0  ;;  %v1183_v39 = vmul.f32 %v2523_v17, %v816_v35  ;;  %v1215_v40 = vmul.f32 %v2523_v17, %v944_v36 }
 0x17b   :  { %v818_v41 = vpop.f32.mrf.mxu0  ;;  %v946_v42 = vpop.f32.mrf.mxu1 }
 0x17c   :  { %v1959_v43 = vpack.c.bf16 %v1317_v37, %v1316_v33  ;;  %v2039_v44 = vpack.c.bf16 %v1349_v38, %v1348_v34  ;;  %v1254_v47 = vadd.f32 %v2529_v21, %v1183_v39  ;;  %v1286_v48 = vadd.f32 %v2529_v21, %v1215_v40 }
 0x17d   :  { %v819_v45 = vpop.f32.mrf.mxu0  ;;  %v947_v46 = vpop.f32.mrf.mxu1 }
 0x17e   :  { %2059 = vst [vmem:[%s2758_s4 + $0x70] sm:$0xff] %v1959_v43   ;;  %2075 = vst [vmem:[%s2758_s4 + $0xf0] sm:$0xff] %v2039_v44   ;;  %v1184_v49 = vmul.f32 %v2523_v17, %v819_v45  ;;  %v1216_v50 = vmul.f32 %v2523_v17, %v947_v46  ;;  %v1318_v55 = vmax.f32 %v1254_v47, 0.0  ;;  %v1350_v56 = vmax.f32 %v1286_v48, 0.0 }
 0x17f   :  { %v821_v51 = vpop.f32.mrf.mxu0  ;;  %v949_v52 = vpop.f32.mrf.mxu1 }
 0x180   :  { %v1255_v53 = vadd.f32 %v2529_v21, %v1184_v49  ;;  %v1287_v54 = vadd.f32 %v2529_v21, %v1216_v50 }
 0x182   :  { %v1319_v57 = vmax.f32 %v1255_v53, 0.0  ;;  %v1351_v58 = vmax.f32 %v1287_v54, 0.0 }
 0x184   :  { %v1964_v59 = vpack.c.bf16 %v1319_v57, %v1318_v55  ;;  %v2044_v60 = vpack.c.bf16 %v1351_v58, %v1350_v56 }
 0x186   :  { %2060 = vst [vmem:[%s2758_s4 + $0x78] sm:$0xff] %v1964_v59   ;;  %2076 = vst [vmem:[%s2758_s4 + $0xf8] sm:$0xff] %v2044_v60  }

</bundles_post_ra>
